<compile_context>
chip_gen: v6e
topology: v6e:2x2x1
jax: 0.10.0
libtpu: 0.0.40
codegen_flags: <defaults>
</compile_context>

<pallas_src>
import jax
import jax.numpy as jnp
from jax.experimental import pallas as pl
from jax.experimental.pallas import tpu as pltpu


# ----------------------------- helpers ---------------------------------------

def _round_up(x, m):
    return ((x + m - 1) // m) * m


def _vmem_plan():
    """Generation-aware plan: (scratch budget, scoped-limit cap, tm_max)."""
    try:
        cap = int(getattr(pltpu.get_tpu_info(), "vmem_capacity_bytes", 0)) or (64 << 20)
    except Exception:
        cap = 64 << 20                       # conservative (v7x-sized) default
    if cap >= (100 << 20):                   # v5e / v6e: 128 MiB physical VMEM
        return 96 << 20, 100 << 20, 1024
    return 40 << 20, 48 << 20, 512           # v7x: 64 MiB physical VMEM


def _pick_tn(cout_pad, fits):
    """Widest lane tile (<=512, multiple of 128) dividing Cout_pad that fits."""
    for tn in (512, 384, 256, 128):
        if tn <= cout_pad and cout_pad % tn == 0 and fits(tn):
            return tn
    return None


# ------------------ fused conv kernel (stride == 1) ---------------------------

def _fused_conv_nhwc(x_pad, w_kkc, *, k, d, h_out, w_out, tn, out_dtype,
                     vmem_limit):
    """x_pad: (N, H_p, W_p, Cin) spatially padded; w_kkc: (k*k, Cin, Cout_pad)."""
    n, h_p, w_p, cin = x_pad.shape
    cout_pad = w_kkc.shape[-1]
    n_tiles = cout_pad // tn

    def kernel(x_ref, w_ref, o_ref):
        # Accumulate the k*k shifted dots in f32; one lane-dense store at the end.
        acc = None
        for kh in range(k):
            for kw in range(k):
                xs = x_ref[0, kh * d: kh * d + h_out, kw * d: kw * d + w_out, :]
                xs = xs.reshape(h_out * w_out, cin)
                part = jnp.dot(xs, w_ref[kh * k + kw],
                               preferred_element_type=jnp.float32)
                acc = part if acc is None else acc + part
        o_ref[...] = acc.reshape(1, h_out, w_out, tn).astype(o_ref.dtype)

    in_isz = x_pad.dtype.itemsize
    out_isz = jnp.dtype(out_dtype).itemsize
    flops = 2 * n * h_out * w_out * cin * k * k * cout_pad
    bytes_accessed = (n * h_p * w_p * cin * in_isz * n_tiles
                      + k * k * cin * cout_pad * in_isz
                      + n * h_out * w_out * cout_pad * out_isz)

    return pl.pallas_call(
        kernel,
        out_shape=jax.ShapeDtypeStruct((n, h_out, w_out, cout_pad), out_dtype),
        grid_spec=pltpu.PrefetchScalarGridSpec(
            num_scalar_prefetch=0,
            # Batch axis first: typically >=2 iterations, so v7x megacore can
            # shard it even when n_tiles == 1.
            grid=(n, n_tiles),
            in_specs=[
                pl.BlockSpec((1, h_p, w_p, cin), lambda b, j: (b, 0, 0, 0)),
                pl.BlockSpec((k * k, cin, tn), lambda b, j: (0, 0, j)),
            ],
            out_specs=pl.BlockSpec((1, h_out, w_out, tn),
                                   lambda b, j: (b, 0, 0, j)),
        ),
        compiler_params=pltpu.CompilerParams(
            dimension_semantics=("parallel", "parallel"),
            vmem_limit_bytes=vmem_limit),
        cost_estimate=pl.CostEstimate(flops=flops, transcendentals=0,
                                      bytes_accessed=bytes_accessed),
    )(x_pad, w_kkc)


# ----------------------- GEMM fallback (im2col path) --------------------------

_RESIDENT_W_BYTES = 8 << 20   # keep W fully VMEM-resident below this (2 bufs)


def _gemm_single_kernel(x_ref, w_ref, o_ref):
    # Single K step: no accumulator scratch, direct MXU result -> output store.
    o_ref[...] = jnp.dot(x_ref[...], w_ref[...],
                         preferred_element_type=jnp.float32).astype(o_ref.dtype)


def _pallas_gemm(x_col, w_mat, *, tm, tk, tn, out_dtype, vmem_limit):
    """x_col: (M, K_pad), w_mat: (K_pad, Cout_pad) -> (M, Cout_pad)."""
    M, K_pad = x_col.shape
    _, cout_pad = w_mat.shape
    assert K_pad % tk == 0 and cout_pad % tn == 0

    m_tiles = pl.cdiv(M, tm)          # ragged last M block is masked by Pallas
    n_tiles = cout_pad // tn
    k_tiles = K_pad // tk
    in_isz = x_col.dtype.itemsize
    out_isz = jnp.dtype(out_dtype).itemsize

    cost = pl.CostEstimate(
        flops=2 * M * K_pad * cout_pad,
        transcendentals=0,
        bytes_accessed=(n_tiles * M * K_pad * in_isz
                        + m_tiles * K_pad * cout_pad * in_isz
                        + M * cout_pad * out_isz))
    params = pltpu.CompilerParams(
        dimension_semantics=("parallel", "parallel", "arbitrary")[:2 + (k_tiles > 1)],
        vmem_limit_bytes=vmem_limit)

    # TODO(synk): on 128 MiB-VMEM parts with tiny K, bump the x_col spec to
    # pipeline_mode=pl.Buffered(3) (budget the extra tile) if DMA is exposed.

    if k_tiles == 1:
        return pl.pallas_call(
            _gemm_single_kernel,
            out_shape=jax.ShapeDtypeStruct((M, cout_pad), out_dtype),
            grid_spec=pltpu.PrefetchScalarGridSpec(
                num_scalar_prefetch=0,
                grid=(m_tiles, n_tiles),                   # >=2 axis first (v7x)
                in_specs=[
                    pl.BlockSpec((tm, K_pad), lambda i, j: (i, 0)),
                    pl.BlockSpec((K_pad, tn), lambda i, j: (0, j)),
                ],
                out_specs=pl.BlockSpec((tm, tn), lambda i, j: (i, j)),
            ),
            compiler_params=params,
            cost_estimate=cost,
        )(x_col, w_mat)

    # ---- K-tiled reduction path ----
    resident_w = 2 * K_pad * tn * in_isz <= _RESIDENT_W_BYTES
    acc_into_out = jnp.dtype(out_dtype) == jnp.float32

    if resident_w:
        # Full-K weight block, DMA'd once per n-tile and resident across M/K.
        w_spec = pl.BlockSpec((K_pad, tn), lambda i, j, kk: (0, j))
    else:
        w_spec = pl.BlockSpec((tk, tn), lambda i, j, kk: (kk, j))

    def w_block(w_ref, kk):
        if resident_w:
            return w_ref[pl.ds(pl.multiple_of(kk * tk, tk), tk), :]
        return w_ref[...]

    if acc_into_out:
        def kernel(x_ref, w_ref, o_ref):
            kk = pl.program_id(2)

            @pl.when(kk == 0)
            def _():
                o_ref[...] = jnp.zeros_like(o_ref)

            o_ref[...] += jnp.dot(x_ref[...], w_block(w_ref, kk),
                                  preferred_element_type=jnp.float32)
        scratch_shapes = []
    else:
        def kernel(x_ref, w_ref, o_ref, acc_ref):
            kk = pl.program_id(2)

            @pl.when(kk == 0)
            def _():
                acc_ref[...] = jnp.zeros_like(acc_ref)

            acc_ref[...] += jnp.dot(x_ref[...], w_block(w_ref, kk),
                                    preferred_element_type=jnp.float32)

            @pl.when(kk == pl.num_programs(2) - 1)
            def _():
                o_ref[...] = acc_ref[...].astype(o_ref.dtype)
        scratch_shapes = [pltpu.VMEM((tm, tn), jnp.float32)]

    return pl.pallas_call(
        kernel,
        out_shape=jax.ShapeDtypeStruct((M, cout_pad), out_dtype),
        grid_spec=pltpu.PrefetchScalarGridSpec(
            num_scalar_prefetch=0,
            grid=(m_tiles, n_tiles, k_tiles),              # reduction axis last
            in_specs=[
                pl.BlockSpec((tm, tk), lambda i, j, kk: (i, kk)),
                w_spec,
            ],
            out_specs=pl.BlockSpec((tm, tn), lambda i, j, kk: (i, j)),
            scratch_shapes=scratch_shapes,
        ),
        compiler_params=params,
        cost_estimate=cost,
    )(x_col, w_mat)


# --------------------------- DynamicConv2d module -----------------------------

class DynamicConv2d:
    """JAX/Pallas port of ofa_fl DynamicConv2d forward (conv2d, no bias)."""

    WS_EPS = 1e-05  # kept for parity; forward() never applies weight std.

    def __init__(self, in_channels, out_channels, kernel_size=1, stride=1,
                 dilation=1, padding=0, *, key=None, dtype=jnp.float32,
                 compute_dtype=None):
        self.in_channels = in_channels
        self.out_channels = out_channels
        self.kernel_size = kernel_size
        self.stride = stride
        self.padding = padding
        self.dilation = dilation
        # compute_dtype=jnp.bfloat16 is the recommended production setting: it
        # halves HBM traffic and ~doubles MXU throughput while keeping f32 MXU
        # accumulation.  Default None (= x.dtype) preserves f32 parity.
        self.compute_dtype = compute_dtype
        if key is None:
            key = jax.random.PRNGKey(0)
        fan_in = in_channels * kernel_size * kernel_size
        self.weight = (jax.random.normal(
            key, (out_channels, in_channels, kernel_size, kernel_size), dtype)
            * (2.0 / fan_in) ** 0.5)

    # Plain-JAX parity helper; the PyTorch forward never calls it.
    def weight_standardization(self, weight):
        if self.WS_EPS is None:
            return weight
        mean = weight.mean(axis=(1, 2, 3), keepdims=True)
        weight = weight - mean
        std = (weight.reshape(weight.shape[0], -1).std(axis=1, ddof=1)
               .reshape(-1, 1, 1, 1) + self.WS_EPS)
        return weight / std

    def get_active_filter(self, out_channel, in_channel):
        # TODO(synk): distinct (out_channel, in_channel) pairs still retrace;
        # a fixed-shape weight + zero masking (or bucketed pads) would give a
        # single compiled tile configuration per generation.
        return self.weight[:out_channel, :in_channel, :, :]

    # ---- im2col (fallback path only; the stride==1 path is fused in-kernel) --
    def _im2col_nhwc(self, x_nhwc, K_pad):
        n, h, w, cin = x_nhwc.shape
        k, s, p, d = self.kernel_size, self.stride, self.padding, self.dilation
        if p > 0:
            x_nhwc = jnp.pad(x_nhwc, ((0, 0), (p, p), (p, p), (0, 0)))
        h_p, w_p = h + 2 * p, w + 2 * p
        h_out = (h_p - d * (k - 1) - 1) // s + 1
        w_out = (w_p - d * (k - 1) - 1) // s + 1

        patches = []
        for kh in range(k):
            for kw in range(k):
                hs, ws = kh * d, kw * d
                patches.append(
                    x_nhwc[:, hs: hs + (h_out - 1) * s + 1: s,
                              ws: ws + (w_out - 1) * s + 1: s, :])
        K = cin * k * k
        if K_pad != K:  # fold K zero-padding into the same concat (no extra pass)
            patches.append(jnp.zeros((n, h_out, w_out, K_pad - K), x_nhwc.dtype))
        col = patches[0] if len(patches) == 1 else jnp.concatenate(patches, axis=-1)
        return col.reshape(n * h_out * w_out, K_pad), (n, h_out, w_out)

    def __call__(self, x, out_channel=None, out_layout="NCHW"):
        if out_channel is None:
            out_channel = self.out_channels
        in_channel = x.shape[1]
        n, _, h, w = x.shape
        k, s, p, d = self.kernel_size, self.stride, self.padding, self.dilation
        filters = self.get_active_filter(out_channel, in_channel)  # (Co,Ci,k,k)

        out_dtype = x.dtype
        compute_dtype = (self.compute_dtype if self.compute_dtype is not None
                         else x.dtype)
        in_isz = jnp.dtype(compute_dtype).itemsize
        out_isz = jnp.dtype(out_dtype).itemsize

        budget, cap, tm_max = _vmem_plan()

        h_out = (h + 2 * p - d * (k - 1) - 1) // s + 1
        w_out = (w + 2 * p - d * (k - 1) - 1) // s + 1
        cout_pad = _round_up(out_channel, 128)     # lane-dense output stores

        # Single NCHW -> NHWC layout pass (contraction dim -> lanes).
        # TODO(synk): keep activations NHWC end-to-end (out_layout="NHWC") in
        # conv chains to skip both full-HBM layout passes.
        x_nhwc = jnp.transpose(x, (0, 2, 3, 1)).astype(compute_dtype)
        # (Co,Ci,kh,kw) -> (kh,kw,Ci,Co); column order matches im2col below.
        w_hwio = jnp.transpose(filters, (2, 3, 1, 0)).astype(compute_dtype)

        # ---------- fused path: conv as k*k shifted MXU dots (no x_col) -------
        if s == 1:
            h_p, w_p = h + 2 * p, w + 2 * p

            def fused_bytes(tn):
                return (2 * h_p * w_p * in_channel * in_isz     # x blocks (x2 buf)
                        + 2 * k * k * in_channel * tn * in_isz  # weight blocks
                        + 2 * h_out * w_out * tn * out_isz      # output blocks
                        + 3 * h_out * w_out * tn * 4)           # f32 accum temps

            tn = _pick_tn(cout_pad, lambda t: fused_bytes(t) <= budget)
            if tn is not None:
                x_pad = x_nhwc if p == 0 else jnp.pad(
                    x_nhwc, ((0, 0), (p, p), (p, p), (0, 0)))
                w_kkc = w_hwio.reshape(k * k, in_channel, out_channel)
                if cout_pad != out_channel:
                    w_kkc = jnp.pad(
                        w_kkc, ((0, 0), (0, 0), (0, cout_pad - out_channel)))
                vmem_limit = int(min(cap, max(32 << 20,
                                              fused_bytes(tn) + (4 << 20))))
                y = _fused_conv_nhwc(x_pad, w_kkc, k=k, d=d, h_out=h_out,
                                     w_out=w_out, tn=tn, out_dtype=out_dtype,
                                     vmem_limit=vmem_limit)
                y = y[..., :out_channel]
                if out_layout == "NHWC":
                    return y
                return jnp.transpose(y, (0, 3, 1, 2))

        # -------- fallback: im2col (HBM) + tiled GEMM (stride>1 / VMEM) -------
        K = in_channel * k * k
        if K > 2048:
            K_pad = _round_up(K, 256)                 # minimal zero-padding
            tk = 512 if K_pad % 512 == 0 else 256
        else:
            K_pad = _round_up(K, max(8, 32 // in_isz))  # 8 f32 / 16 bf16 / 32 i8
            tk = K_pad                                   # single K step

        x_col, (n, h_out, w_out) = self._im2col_nhwc(x_nhwc, K_pad)
        M = n * h_out * w_out

        w_mat = w_hwio.reshape(K, out_channel)
        w_mat = jnp.pad(w_mat, ((0, K_pad - K), (0, cout_pad - out_channel)))

        def gemm_bytes(tm, tn):
            single_k = (tk == K_pad)
            resident = (not single_k) and (2 * K_pad * tn * in_isz
                                           <= _RESIDENT_W_BYTES)
            w_b = 2 * (K_pad if (single_k or resident) else tk) * tn * in_isz
            acc_b = (0 if (single_k or jnp.dtype(out_dtype) == jnp.float32)
                     else tm * tn * 4)
            return 2 * tm * tk * in_isz + w_b + 2 * tm * tn * out_isz + acc_b

        # Widest lane tile that fits -> n_tiles often 1 -> x_col streamed once.
        tn = _pick_tn(cout_pad, lambda t: gemm_bytes(128, t) <= budget) or 128
        # M tile: >=2 grid steps when possible, 128-aligned, VMEM-safe.
        tm = min(tm_max, max(128, _round_up(pl.cdiv(M, 2), 128)))
        while tm > 128 and gemm_bytes(tm, tn) > budget:
            tm -= 128

        vmem_limit = int(min(cap, max(32 << 20, gemm_bytes(tm, tn) + (4 << 20))))
        y = _pallas_gemm(x_col, w_mat, tm=tm, tk=tk, tn=tn,
                         out_dtype=out_dtype, vmem_limit=vmem_limit)
        y = y.reshape(n, h_out, w_out, cout_pad)[..., :out_channel]
        if out_layout == "NHWC":
            return y
        return jnp.transpose(y, (0, 3, 1, 2))         # NCHW for PyTorch parity


# ----------------------------------- main -------------------------------------

def _conv_ref(x, w, stride, padding, dilation, preferred=None):
    return jax.lax.conv_general_dilated(
        x, w,
        window_strides=(stride, stride),
        padding=[(padding, padding), (padding, padding)],
        rhs_dilation=(dilation, dilation),
        dimension_numbers=("NCHW", "OIHW", "NCHW"),
        preferred_element_type=preferred,
    )


if __name__ == "__main__":
    key = jax.random.PRNGKey(0)
    kx, kw1, kw2, kw3, kw4 = jax.random.split(key, 5)

    # Tolerances cover MXU default-precision differences vs the XLA reference;
    # any real indexing/accumulation bug produces O(1) errors.
    TOL = dict(atol=2e-2, rtol=2e-2)

    x = jax.random.normal(kx, (2, 4, 16, 16), jnp.float32)   # NCHW

    # Case 1: module defaults (1x1 pointwise conv) -> fused path.
    m1 = DynamicConv2d(4, 8, kernel_size=1, key=kw1)
    y1 = jax.block_until_ready(m1(x))
    r1 = _conv_ref(x, m1.weight, 1, 0, 1)
    assert y1.shape == r1.shape
    assert jnp.allclose(y1, r1, **TOL), "1x1 conv mismatch"

    # Case 2: 3x3 conv + padding + active out_channel slice -> fused path.
    m2 = DynamicConv2d(4, 8, kernel_size=3, padding=1, key=kw2)
    y2 = jax.block_until_ready(m2(x, out_channel=6))
    r2 = _conv_ref(x, m2.weight[:6], 1, 1, 1)
    assert y2.shape == (2, 6, 16, 16)
    assert jnp.allclose(y2, r2, **TOL), "3x3 conv mismatch"

    # Case 3: bf16 operands with f32 MXU accumulation.
    m3 = DynamicConv2d(4, 8, kernel_size=3, padding=1, key=kw2,
                       compute_dtype=jnp.bfloat16)
    y3 = jax.block_until_ready(m3(x))
    r3 = _conv_ref(x.astype(jnp.bfloat16), m3.weight.astype(jnp.bfloat16),
                   1, 1, 1, preferred=jnp.float32)
    assert y3.dtype == jnp.float32
    assert jnp.allclose(y3, r3, **TOL), "bf16 conv mismatch"

    # Case 4: stride-2 conv with ragged M (M=162, tm=128) -> im2col+GEMM path.
    x4 = jax.random.normal(kw3, (2, 4, 17, 17), jnp.float32)
    m4 = DynamicConv2d(4, 8, kernel_size=3, stride=2, padding=1, key=kw2)
    y4 = jax.block_until_ready(m4(x4))
    r4 = _conv_ref(x4, m4.weight, 2, 1, 1)
    assert y4.shape == r4.shape == (2, 8, 9, 9)
    assert jnp.allclose(y4, r4, **TOL), "strided conv mismatch"

    # Case 5: large-K strided conv (K=2088>2048) -> K-tiled GEMM with resident
    # weight block and direct f32 accumulation into the output tile.
    x5 = jax.random.normal(kw4, (1, 232, 6, 6), jnp.float32)
    m5 = DynamicConv2d(232, 64, kernel_size=3, stride=2, padding=1, key=kw1)
    y5 = jax.block_until_ready(m5(x5))
    r5 = _conv_ref(x5, m5.weight, 2, 1, 1)
    assert y5.shape == r5.shape == (1, 64, 3, 3)
    assert jnp.allclose(y5, r5, **TOL), "large-K conv mismatch"

    print("KERNEL_OK")
</pallas_src>

<mosaic_0001>
module attributes {stable_mosaic.version = 11 : i64} {
  func.func @kernel(%arg0: i32, %arg1: i32, %arg2: memref<1x16x16x4xf32, #tpu.memory_space<vmem>>, %arg3: memref<1x4x128xf32, #tpu.memory_space<vmem>>, %arg4: memref<1x16x16x128xf32, #tpu.memory_space<vmem>>) attributes {dimension_semantics = [#tpu.dimension_semantics<parallel>, #tpu.dimension_semantics<parallel>], iteration_bounds = array<i64: 2, 1>, scalar_prefetch = 0 : i64, scratch_operands = 0 : i64, tpu.core_type = #tpu.core_type<tc>, window_params = [{transform_indices = @transform_0, window_bounds = array<i64: 1, 16, 16, 4>}, {transform_indices = @transform_1, window_bounds = array<i64: 1, 4, 128>}, {transform_indices = @transform_2, window_bounds = array<i64: 1, 16, 16, 128>}]} {
    %c0 = arith.constant 0 : index
    %c0_0 = arith.constant 0 : index
    %c0_1 = arith.constant 0 : index
    %c0_2 = arith.constant 0 : index
    %0 = vector.load %arg2[%c0, %c0_0, %c0_1, %c0_2] : memref<1x16x16x4xf32, #tpu.memory_space<vmem>>, vector<1x16x16x4xf32>
    %1 = vector.shape_cast %0 : vector<1x16x16x4xf32> to vector<16x16x4xf32>
    %2 = vector.shape_cast %1 : vector<16x16x4xf32> to vector<256x4xf32>
    %c0_3 = arith.constant 0 : index
    %c0_4 = arith.constant 0 : index
    %c0_5 = arith.constant 0 : index
    %3 = vector.load %arg3[%c0_3, %c0_4, %c0_5] : memref<1x4x128xf32, #tpu.memory_space<vmem>>, vector<1x4x128xf32>
    %4 = vector.shape_cast %3 : vector<1x4x128xf32> to vector<4x128xf32>
    %cst = arith.constant dense<0.000000e+00> : vector<256x128xf32>
    %5 = tpu.matmul %2, %4, %cst {dimension_numbers = #tpu.dot_dimension_numbers<[1], [0], [0], [1], [0, 0, 1, 1], [], []>} : vector<256x4xf32>, vector<4x128xf32>, vector<256x128xf32> -> vector<256x128xf32>
    %6 = vector.shape_cast %5 : vector<256x128xf32> to vector<1x16x16x128xf32>
    %c0_6 = arith.constant 0 : index
    %c0_7 = arith.constant 0 : index
    %c0_8 = arith.constant 0 : index
    %c0_9 = arith.constant 0 : index
    %7 = vector.load %arg4[%c0_6, %c0_7, %c0_8, %c0_9] : memref<1x16x16x128xf32, #tpu.memory_space<vmem>>, vector<1x16x16x128xf32>
    tpu.vector_store %arg4[%c0_6, %c0_7, %c0_8, %c0_9], %6 {strides = array<i32>} : memref<1x16x16x128xf32, #tpu.memory_space<vmem>>, vector<1x16x16x128xf32>,
    return
  }
  func.func @transform_0(%arg0: i32, %arg1: i32) -> (i32, i32, i32, i32) {
    %c0_i32 = arith.constant 0 : i32
    %c0_i32_0 = arith.constant 0 : i32
    %c0_i32_1 = arith.constant 0 : i32
    %c0_i32_2 = arith.constant 0 : i32
    return %arg0, %c0_i32, %c0_i32_0, %c0_i32_1 : i32, i32, i32, i32
  }
  func.func @transform_1(%arg0: i32, %arg1: i32) -> (i32, i32, i32) {
    %c0_i32 = arith.constant 0 : i32
    %c0_i32_0 = arith.constant 0 : i32
    %c0_i32_1 = arith.constant 0 : i32
    return %c0_i32, %c0_i32_0, %arg1 : i32, i32, i32
  }
  func.func @transform_2(%arg0: i32, %arg1: i32) -> (i32, i32, i32, i32) {
    %c0_i32 = arith.constant 0 : i32
    %c0_i32_0 = arith.constant 0 : i32
    %c0_i32_1 = arith.constant 0 : i32
    return %arg0, %c0_i32, %c0_i32_0, %arg1 : i32, i32, i32, i32
  }
}

</mosaic_0001>

<bundles_post_ra>
// kernel: tpu_custom_call.1
= control target key start
LH: loop header
LB: loop body
LE: loop exit
PB: predicated region body
PF: predicated region fallthrough
CT: control target
= control target key end

     0   :  { %7 = vsyncpa [#allocation3], 0  ;;  %s1175_s0 = inlined_call_operand.vmem [shape: f32[2,16,16,4], index: 0, kind: input, shape index: {}]   ;;  %s1176_s1 = inlined_call_operand.vmem [shape: f32[1,4,128], index: 1, kind: input, shape index: {}]   ;;  %s1177_s2 = inlined_call_operand.hbm [shape: f32[2,16,16,128], index: 2, kind: output, shape index: {}]  }
   0x1   :  { %9 = vsyncpa [#allocation3 + $0x1], 0  ;;  %s953_s9 = smov 0   ;;  %s955_s10 = smov 0  }
   0x2   :  { %s957_s11 = smov 0   ;;  %s959_s12 = smov 0  }
   0x3   :  { %s961_s13 = smov 0   ;;  %s963_s14 = smov 0  }
   0x4 LB: > { %s666_s15 = sadd.s32 4294967295, %s933_s14   ;;  %s667_s16 = sadd.s32 4294967294, %s933_s14   ;;  %s933_s14 = sphi %s963_s14, %s15_s14   ;;  %s929_s13 = sphi %s961_s13, %s1184_s13   ;;  %s925_s12 = sphi %s959_s12, %s1183_s12   ;;  %s921_s11 = sphi %s957_s11, %s1182_s11   ;;  %s917_s10 = sphi %s955_s10, %s1181_s10   ;;  %s913_s9 = sphi %s953_s9, %s1180_s9  }
   0x5   : > { %s27_s17 = sadd.s32 1, %s929_s13  ;;  %s88_s18 = sadd.s32 1, %s921_s11 }
   0x6   : > { %p29_p0 = scmp.ge.s32.totalorder %s27_s17, 2  ;;  %p98_p1 = scmp.ne.s32.totalorder %s921_s11, %s917_s10 }
   0x7   : > { %p99_p2 = scmp.eq.s32.totalorder %s666_s15, 1  ;;  %p104_p3 = scmp.ne.s32.totalorder %s917_s10, %s913_s9 }
   0x8   : > { %s1186_s17 = smov (%p29_p0, %s27_s17), 0  ;;  %p105_p5 = scmp.eq.s32.totalorder %s667_s16, 1 }
   0x9   : > { %p993_p4 = por %p99_p2, %p98_p1  ;;  %s83_s20 = ssub.s32 %s929_s13, %s1186_s17 }
   0xa   : > { %p671_p6 = scmp.ge.s32.totalorder %s933_s14, 1  ;;  %p86_p7 = scmp.eq.s32.totalorder %s83_s20, 0 }
   0xb   : > { %p1000_p8 = por %p105_p5, %p104_p3  ;;  %p138_p9 = scmp.lt.s32.totalorder %s933_s14, 3 }
   0xc   : > { %s1006_s22 = scalar_select %p86_p7, %s921_s11, %s88_s18  }
   0xd   : > { %p139_p10 = pnand %p671_p6, %p138_p9 }
   0xe   : > { %p164_p11 = scmp.lt.s32.totalorder (!%p139_p10), %s925_s12, 1  ;;  %s161_s30 = sand.u32 (!%p139_p10), 1, %s917_s10  }
   0xf   : > { %142 = sbr.rel (%p139_p10) target bundleno = 264 (0x108), region = 28  ;;  %s672_s3 = sshll.u32 (!%p139_p10), %s161_s30, 8 }
  0x10   : > { %s1085_s4 = scalar_lea.vmem (!%p139_p10), [#allocation2], %s672_s3  ;;  %s714_s5 = sshll.u32 (!%p139_p10), %s925_s12, 12 }
  0x11   : > { %s579_s6 = sshll.u32 (!%p139_p10), %s1085_s4, 4  ;;  %s1120_s15 = scalar_lea.hbm (!%p139_p10), %s1177_s2, %s714_s5  ;;  %s1122_s6 = int_to_ptr.vmem [resolvable:$true] %s579_s6 }
  0x12   : > { %s857_s16 = scalar_lea.vmem (!%p139_p10), %s1122_s6, 4096  ;;  %s935_s18 = smov (!%p139_p10), [#allocation2]  }
  0x13   : > { %p858_p12 = scmp.ne.s32.totalorder (!%p139_p10), %s1122_s6, %s857_s16  ;;  %s861_s20 = sshll.u32 (!%p139_p10), %s935_s18, 4  ;;  %s862_s20 = int_to_ptr.vmem [resolvable:$false] %s861_s20 }
  0x14   : > { %v205_v0 = vld [vmem:[%s1176_s1] sm:$0xf]  ;;  %vm303_vm0 = vcmask 1043456   ;;  %s165_s25 = scalar_select %p164_p11, %s925_s12, 1  ;;  %vm206_vm1 = vcmask 31744  }
  0x15   : > { %748 = vmatprep.subr.msk.mxu0 %vm303_vm0, %v205_v0  ;;  %798 = vmatprep.subr.msk.mxu1 %vm303_vm0, %v205_v0  ;;  %s1130_s12 = scalar_lea.sflag [#allocation3], %s161_s30  ;;  %p859_p13 = pnand %p858_p12, %p993_p4 }
  0x16   : > { %749 = vmatpush3.msk.msra.mxu0 %vm303_vm0, %v205_v0  ;;  %799 = vmatpush3.msk.msra.mxu1 %vm303_vm0, %v205_v0  ;;  %s713_s26 = sshll.u32 %s165_s25, 8  ;;  %s863_s23 = scalar_lea.vmem %s862_s20, 8192 }
  0x17   : > { %s1016_s29 = scalar_lea.vmem %s1175_s0, %s713_s26  ;;  %p860_p0 = pneg %p859_p13 }
  0x18   : > { %v173_v1 = vld [vmem:[%s1016_s29] sm:$0xff]  ;;  %v174_v3 = vld [vmem:[%s1016_s29 + $0x8] sm:$0xff]  ;;  %v175_v5 = vld [vmem:[%s1016_s29 + $0x10] sm:$0xff]  ;;  %p864_p1 = scmp.lt.s32.totalorder %s1122_s6, %s862_s20  ;;  %p865_p2 = scmp.lt.s32.totalorder %s863_s23, %s857_s16 }
  0x19   : > { %v189_v2 = vld [vmem:[%s1016_s29 + $0x80] sm:$0xff]  ;;  %750 = vmatprep.mubr.msk.f32.mxu0 %vm206_vm1, %v173_v1  ;;  %v190_v4 = vld [vmem:[%s1016_s29 + $0x88] sm:$0xff]  ;;  %v191_v6 = vld [vmem:[%s1016_s29 + $0x90] sm:$0xff] }
  0x1a   : > { %774 = vmatprep.mubr.msk.f32.mxu1 %vm206_vm1, %v189_v2  ;;  %751 = vmatmul.mubr.msk.f32.vlgmr.msra.gmra.mxu0 %vm206_vm1, %v174_v3  ;;  %v176_v7 = vld [vmem:[%s1016_s29 + $0x18] sm:$0xff]  ;;  %v177_v9 = vld [vmem:[%s1016_s29 + $0x20] sm:$0xff]  ;;  %v178_v11 = vld [vmem:[%s1016_s29 + $0x28] sm:$0xff]  ;;  %p866_p3 = por %p865_p2, %p864_p1 }
  0x1b   : > { %775 = vmatmul.mubr.msk.f32.vlgmr.msra.gmra.mxu1 %vm206_vm1, %v190_v4  ;;  %753 = vmatprep.mubr.msk.f32.mxu0 %vm206_vm1, %v175_v5  ;;  %v192_v8 = vld [vmem:[%s1016_s29 + $0x98] sm:$0xff]  ;;  %v193_v10 = vld [vmem:[%s1016_s29 + $0xa0] sm:$0xff]  ;;  %v194_v12 = vld [vmem:[%s1016_s29 + $0xa8] sm:$0xff] }
  0x1c   : > { %777 = vmatprep.mubr.msk.f32.mxu1 %vm206_vm1, %v191_v6  ;;  %v179_v13 = vld [vmem:[%s1016_s29 + $0x30] sm:$0xff]  ;;  %v180_v15 = vld [vmem:[%s1016_s29 + $0x38] sm:$0xff]  ;;  %v181_v17 = vld [vmem:[%s1016_s29 + $0x40] sm:$0xff]  ;;  %p867_p5 = pnand %p866_p3, %p860_p0 }
  0x1d   : > { %v195_v14 = vld [vmem:[%s1016_s29 + $0xb0] sm:$0xff]  ;;  %v196_v16 = vld [vmem:[%s1016_s29 + $0xb8] sm:$0xff]  ;;  %v197_v18 = vld [vmem:[%s1016_s29 + $0xc0] sm:$0xff] }
  0x1e   : > { %754 = vmatmul.mubr.msk.f32.gmra.mxu0 %vm206_vm1, %v176_v7  ;;  %v182_v19 = vld [vmem:[%s1016_s29 + $0x48] sm:$0xff]  ;;  %v183_v21 = vld [vmem:[%s1016_s29 + $0x50] sm:$0xff]  ;;  %v184_v23 = vld [vmem:[%s1016_s29 + $0x58] sm:$0xff] }
  0x1f   : > { %778 = vmatmul.mubr.msk.f32.gmra.mxu1 %vm206_vm1, %v192_v8  ;;  %756 = vmatprep.mubr.msk.f32.mxu0 %vm206_vm1, %v177_v9  ;;  %v198_v20 = vld [vmem:[%s1016_s29 + $0xc8] sm:$0xff]  ;;  %v199_v22 = vld [vmem:[%s1016_s29 + $0xd0] sm:$0xff]  ;;  %v200_v24 = vld [vmem:[%s1016_s29 + $0xd8] sm:$0xff] }
  0x20   : > { %780 = vmatprep.mubr.msk.f32.mxu1 %vm206_vm1, %v193_v10  ;;  %v185_v25 = vld [vmem:[%s1016_s29 + $0x60] sm:$0xff]  ;;  %v186_v27 = vld [vmem:[%s1016_s29 + $0x68] sm:$0xff]  ;;  %v187_v29 = vld [vmem:[%s1016_s29 + $0x70] sm:$0xff] }
  0x21   : > { %v201_v26 = vld [vmem:[%s1016_s29 + $0xe0] sm:$0xff]  ;;  %v202_v28 = vld [vmem:[%s1016_s29 + $0xe8] sm:$0xff]  ;;  %v203_v30 = vld [vmem:[%s1016_s29 + $0xf0] sm:$0xff] }
  0x22   : > { %757 = vmatmul.mubr.msk.f32.gmra.mxu0 %vm206_vm1, %v178_v11  ;;  %v188_v31 = vld [vmem:[%s1016_s29 + $0x78] sm:$0xff] }
  0x23   : > { %781 = vmatmul.mubr.msk.f32.gmra.mxu1 %vm206_vm1, %v194_v12  ;;  %759 = vmatprep.mubr.msk.f32.mxu0 %vm206_vm1, %v179_v13  ;;  %v204_v32 = vld [vmem:[%s1016_s29 + $0xf8] sm:$0xff] }
  0x24   : > { %783 = vmatprep.mubr.msk.f32.mxu1 %vm206_vm1, %v195_v14 }
  0x26   : > { %760 = vmatmul.mubr.msk.f32.gmra.mxu0 %vm206_vm1, %v180_v15 }
  0x27   : > { %784 = vmatmul.mubr.msk.f32.gmra.mxu1 %vm206_vm1, %v196_v16  ;;  %762 = vmatprep.mubr.msk.f32.mxu0 %vm206_vm1, %v181_v17 }
  0x28   : > { %786 = vmatprep.mubr.msk.f32.mxu1 %vm206_vm1, %v197_v18 }
  0x2a   : > { %763 = vmatmul.mubr.msk.f32.gmra.mxu0 %vm206_vm1, %v182_v19 }
  0x2b   : > { %787 = vmatmul.mubr.msk.f32.gmra.mxu1 %vm206_vm1, %v198_v20  ;;  %765 = vmatprep.mubr.msk.f32.mxu0 %vm206_vm1, %v183_v21 }
  0x2c   : > { %789 = vmatprep.mubr.msk.f32.mxu1 %vm206_vm1, %v199_v22 }
  0x2e   : > { %766 = vmatmul.mubr.msk.f32.gmra.mxu0 %vm206_vm1, %v184_v23 }
  0x2f   : > { %790 = vmatmul.mubr.msk.f32.gmra.mxu1 %vm206_vm1, %v200_v24  ;;  %768 = vmatprep.mubr.msk.f32.mxu0 %vm206_vm1, %v185_v25 }
  0x30   : > { %792 = vmatprep.mubr.msk.f32.mxu1 %vm206_vm1, %v201_v26 }
  0x32   : > { %769 = vmatmul.mubr.msk.f32.gmra.mxu0 %vm206_vm1, %v186_v27 }
  0x33   : > { %793 = vmatmul.mubr.msk.f32.gmra.mxu1 %vm206_vm1, %v202_v28  ;;  %771 = vmatprep.mubr.msk.f32.mxu0 %vm206_vm1, %v187_v29 }
  0x34   : > { %795 = vmatprep.mubr.msk.f32.mxu1 %vm206_vm1, %v203_v30 }
  0x36   : > { %772 = vmatmul.mubr.msk.f32.gmra.mxu0 %vm206_vm1, %v188_v31 }
  0x37   : > { %796 = vmatmul.mubr.msk.f32.gmra.mxu1 %vm206_vm1, %v204_v32 }
  0xda   : > { %v752_v33 = vpop.f32.mrf.mxu0 }
  0xdb   : > { %v776_v34 = vpop.f32.mrf.mxu1  ;;  %533 = vst [vmem:[%s1085_s4 + $0x8] sm:$0xff] %v752_v33 }
  0xdc   : > { %549 = vst [vmem:[%s1085_s4 + $0x88] sm:$0xff] %v776_v34  ;;  %v373_v35 = vpop.f32.mrf.mxu0 }
  0xdd   : > { %v453_v36 = vpop.f32.mrf.mxu1  ;;  %532 = vst [vmem:[%s1085_s4] sm:$0xff] %v373_v35 }
  0xde   : > { %548 = vst [vmem:[%s1085_s4 + $0x80] sm:$0xff] %v453_v36  ;;  %v755_v37 = vpop.f32.mrf.mxu0 }
  0xdf   : > { %v779_v38 = vpop.f32.mrf.mxu1  ;;  %535 = vst [vmem:[%s1085_s4 + $0x18] sm:$0xff] %v755_v37 }
  0xe0   : > { %551 = vst [vmem:[%s1085_s4 + $0x98] sm:$0xff] %v779_v38  ;;  %v383_v39 = vpop.f32.mrf.mxu0 }
  0xe1   : > { %v463_v40 = vpop.f32.mrf.mxu1  ;;  %534 = vst [vmem:[%s1085_s4 + $0x10] sm:$0xff] %v383_v39 }
  0xe2   : > { %550 = vst [vmem:[%s1085_s4 + $0x90] sm:$0xff] %v463_v40  ;;  %v758_v41 = vpop.f32.mrf.mxu0 }
  0xe3   : > { %v782_v42 = vpop.f32.mrf.mxu1  ;;  %537 = vst [vmem:[%s1085_s4 + $0x28] sm:$0xff] %v758_v41 }
  0xe4   : > { %553 = vst [vmem:[%s1085_s4 + $0xa8] sm:$0xff] %v782_v42  ;;  %v393_v43 = vpop.f32.mrf.mxu0 }
  0xe5   : > { %v473_v44 = vpop.f32.mrf.mxu1  ;;  %536 = vst [vmem:[%s1085_s4 + $0x20] sm:$0xff] %v393_v43 }
  0xe6   : > { %552 = vst [vmem:[%s1085_s4 + $0xa0] sm:$0xff] %v473_v44  ;;  %v761_v45 = vpop.f32.mrf.mxu0 }
  0xe7   : > { %v785_v46 = vpop.f32.mrf.mxu1  ;;  %539 = vst [vmem:[%s1085_s4 + $0x38] sm:$0xff] %v761_v45 }
  0xe8   : > { %555 = vst [vmem:[%s1085_s4 + $0xb8] sm:$0xff] %v785_v46  ;;  %v403_v47 = vpop.f32.mrf.mxu0 }
  0xe9   : > { %v483_v48 = vpop.f32.mrf.mxu1  ;;  %538 = vst [vmem:[%s1085_s4 + $0x30] sm:$0xff] %v403_v47 }
  0xea   : > { %554 = vst [vmem:[%s1085_s4 + $0xb0] sm:$0xff] %v483_v48  ;;  %v764_v49 = vpop.f32.mrf.mxu0 }
  0xeb   : > { %v788_v50 = vpop.f32.mrf.mxu1  ;;  %541 = vst [vmem:[%s1085_s4 + $0x48] sm:$0xff] %v764_v49 }
  0xec   : > { %557 = vst [vmem:[%s1085_s4 + $0xc8] sm:$0xff] %v788_v50  ;;  %v413_v51 = vpop.f32.mrf.mxu0 }
  0xed   : > { %v493_v52 = vpop.f32.mrf.mxu1  ;;  %540 = vst [vmem:[%s1085_s4 + $0x40] sm:$0xff] %v413_v51 }
  0xee   : > { %556 = vst [vmem:[%s1085_s4 + $0xc0] sm:$0xff] %v493_v52  ;;  %v767_v53 = vpop.f32.mrf.mxu0 }
  0xef   : > { %v791_v54 = vpop.f32.mrf.mxu1  ;;  %543 = vst [vmem:[%s1085_s4 + $0x58] sm:$0xff] %v767_v53 }
  0xf0   : > { %559 = vst [vmem:[%s1085_s4 + $0xd8] sm:$0xff] %v791_v54  ;;  %v423_v55 = vpop.f32.mrf.mxu0 }
  0xf1   : > { %v503_v56 = vpop.f32.mrf.mxu1  ;;  %542 = vst [vmem:[%s1085_s4 + $0x50] sm:$0xff] %v423_v55 }
  0xf2   : > { %558 = vst [vmem:[%s1085_s4 + $0xd0] sm:$0xff] %v503_v56  ;;  %v770_v57 = vpop.f32.mrf.mxu0 }
  0xf3   : > { %v794_v58 = vpop.f32.mrf.mxu1  ;;  %545 = vst [vmem:[%s1085_s4 + $0x68] sm:$0xff] %v770_v57 }
  0xf4   : > { %561 = vst [vmem:[%s1085_s4 + $0xe8] sm:$0xff] %v794_v58  ;;  %v433_v59 = vpop.f32.mrf.mxu0 }
  0xf5   : > { %v513_v60 = vpop.f32.mrf.mxu1  ;;  %544 = vst [vmem:[%s1085_s4 + $0x60] sm:$0xff] %v433_v59 }
  0xf6   : > { %560 = vst [vmem:[%s1085_s4 + $0xe0] sm:$0xff] %v513_v60  ;;  %v773_v61 = vpop.f32.mrf.mxu0 }
  0xf7   : > { %v797_v62 = vpop.f32.mrf.mxu1  ;;  %547 = vst [vmem:[%s1085_s4 + $0x78] sm:$0xff] %v773_v61 }
  0xf8   : > { %563 = vst [vmem:[%s1085_s4 + $0xf8] sm:$0xff] %v797_v62  ;;  %v443_v63 = vpop.f32.mrf.mxu0 }
  0xf9   : > { %v523_v0 = vpop.f32.mrf.mxu1  ;;  %546 = vst [vmem:[%s1085_s4 + $0x70] sm:$0xff] %v443_v63 }
  0xfa   : > { %562 = vst [vmem:[%s1085_s4 + $0xf0] sm:$0xff] %v523_v0 }
  0xfb   : > { %870 = shalt.err (!%p867_p5)
}
  0xfc   : > { %s871_s24 = scalar_lea.hbm %s1120_s15, 4096  ;;  %s875_s27 = scalar_lea.hbm %s1177_s2, 8192 }
  0xfd   : > { %p872_p6 = scmp.ne.s32.totalorder %s1120_s15, %s871_s24  ;;  %p876_p10 = scmp.lt.s32.totalorder %s1120_s15, %s1177_s2 }
  0xfe   : > { %p877_p11 = scmp.lt.s32.totalorder %s875_s27, %s871_s24 }
  0xff   : > { %p873_p7 = pnand %p872_p6, %p993_p4 }
 0x100   : > { %p878_p12 = por %p877_p11, %p876_p10 }
 0x101   : > { %p874_p9 = pneg %p873_p7 }
 0x103   : > { %p879_p13 = pnand %p878_p12, %p874_p9 }
 0x105   : > { %882 = shalt.err (!%p879_p13)
}
 0x106   : > { %s936_s30 = smov 128   ;;  %s937_s3 = smov 8  }
 0x107   : > { %800 = dma.vmem_to_hbm [thread:$0]  (%p993_p4), %s1122_s6, 4096, %s1120_s15, %s1130_s12, %s936_s30, %s936_s30, %s937_s3  }
 0x108 PF: > { %p806_p0 = scmp.ge.s32.totalorder %s933_s14, 2  ;;  %s594_s4 = sand.u32 1, %s913_s9  }
 0x109   : > { %s595_s5 = scalar_lea.sflag [#allocation3], %s594_s4 }
 0x10a   : > { %p803_p1 = pnand %p806_p0, %p1000_p8 }
 0x10c   : > { %p804_p2 = pneg %p803_p1 }
 0x10e   : > { %908 = dma.done.wait (%p804_p2), %s595_s5, 4096  }
 0x10f   : > { %910 = vsyncadd (%p804_p2), %s595_s5, 4294963200  ;;  %s15_s14 = sadd.s32 1, %s933_s14   ;;  %s1180_s9 = smov %s917_s10 }
 0x110   : > { %p12_p3 = scmp.ge.s32.totalorder %s15_s14, 4   ;;  %s1181_s10 = smov %s921_s11 }
 0x111   : > { %s1182_s11 = smov %s1006_s22  ;;  %s1183_s12 = smov %s929_s13 }
 0x112   : > { %s1184_s13 = smov %s1186_s17  ;;  %14 = sbr.rel (!%p12_p3) target bundleno = 4 (0x4), region = 66 }
 0x117   :  { %600 = vsyncpa [#allocation3], 1 }
 0x118   :  { %602 = vsyncpa [#allocation3 + $0x1], 1 }

</bundles_post_ra>
